<compile_context>
chip_gen: v5e
topology: v5e:2x2
jax: 0.10.0
libtpu: 0.0.40
codegen_flags: <defaults>
</compile_context>

<pallas_src>
import jax
import jax.numpy as jnp
from jax.experimental import pallas as pl
from jax.experimental.pallas import tpu as pltpu

_LANE = 128
_SUBLANE = 8


def _round_up(a, b):
    return ((a + b - 1) // b) * b


def _linear2x2_kernel(params_ref, x_ref, o_ref):
    """VPU linear layer on an interleaved lane-dense block.

    params_ref: SMEM f32[6] = [w00, w01, w10, w11, b0, b1]
    x_ref:      VMEM f32[tile_rows, 128]; lanes = (x0, x1, x0, x1, ...)
    o_ref:      VMEM f32[tile_rows, 128]; lanes = (y0, y1, y0, y1, ...)
    """
    x = x_ref[...]
    n_lane = x.shape[-1]

    # Lane parity mask (x0/y0 lanes are even, x1/y1 lanes are odd).
    lane = jax.lax.broadcasted_iota(jnp.int32, (1, n_lane), 1)
    is_even = (lane % 2) == 0

    # Pair-swap along lanes: even lane j needs the value at j+1 (its x1),
    # odd lane j needs the value at j-1 (its x0).  Cyclic wrap-around lanes are
    # never selected by the parity mask.  XLU rotations — free at the DMA roofline.
    take_next = pltpu.roll(x, shift=n_lane - 1, axis=1)  # out[j] = x[j+1]
    take_prev = pltpu.roll(x, shift=1, axis=1)           # out[j] = x[j-1]
    partner = jnp.where(is_even, take_next, take_prev)

    # Per-lane coefficients (broadcast scalars from SMEM, selected by parity).
    w_self = jnp.where(is_even, params_ref[0], params_ref[3])  # w00 | w11
    w_part = jnp.where(is_even, params_ref[1], params_ref[2])  # w01 | w10
    b_lane = jnp.where(is_even, params_ref[4], params_ref[5])  # b0  | b1

    # y0 = w00*x0 + w01*x1 + b0 (even lanes); y1 = w10*x0 + w11*x1 + b1 (odd lanes)
    o_ref[...] = x * w_self + partner * w_part + b_lane


def linear_classifier_forward(x, weight, bias, *, target_block_bytes=4 << 20):
    """Pallas forward for nn.Linear(2, 2, bias=True): y = x @ W^T + b.

    x: (N, 2), weight: (2, 2) torch layout (out, in), bias: (2,).
    """
    n, in_f = x.shape
    out_f, in_f_w = weight.shape
    assert in_f == 2 and in_f_w == 2 and out_f == 2, "kernel specialised to Linear(2, 2)"

    orig_dtype = x.dtype
    xf = x.astype(jnp.float32)

    pair = _LANE // 2  # 64 samples per 128-lane row

    # Pad N to a multiple of 64 so the row-major (N, 2) buffer reinterprets as
    # (rows, 128) with zero data movement (only a small tail pad when needed).
    n_pad = _round_up(max(n, pair), pair)
    if n_pad != n:
        xf = jnp.pad(xf, ((0, n_pad - n), (0, 0)))
    total_rows = n_pad // pair                     # = 2*n_pad / 128
    x_rows = xf.reshape(total_rows, _LANE)         # free, row-major reinterpretation

    # Tile sizing: MiB-scale blocks to amortize the ~0.35us per-step overhead.
    target_rows = max(_SUBLANE, (target_block_bytes // (_LANE * 4)) // _SUBLANE * _SUBLANE)
    if total_rows > target_rows:
        tile_rows = target_rows                                   # >= 2 tiles already
    elif total_rows >= 2 * _SUBLANE:
        tile_rows = _round_up(pl.cdiv(total_rows, 2), _SUBLANE)   # >=2 tiles for v7x megacore
    else:
        tile_rows = total_rows                                    # single full-array block
    num_tiles = pl.cdiv(total_rows, tile_rows)

    block_bytes = tile_rows * _LANE * 4
    # in + out, double-buffered, plus slack; stay under v7x's 64 MiB physical VMEM.
    vmem_limit = min(4 * block_bytes + (8 << 20), 60 << 20)

    # [w00, w01, w10, w11, b0, b1] as SMEM scalars.
    params = jnp.concatenate([weight.reshape(-1), bias.reshape(-1)]).astype(jnp.float32)

    out_rows = pl.pallas_call(
        _linear2x2_kernel,
        out_shape=jax.ShapeDtypeStruct((total_rows, _LANE), jnp.float32),
        grid=(num_tiles,),
        in_specs=[
            # Tiny params resident in SMEM, not re-DMA'd per step.
            pl.BlockSpec(memory_space=pltpu.MemorySpace.SMEM),
            # Dense (8,128)-aligned slabs of interleaved samples.
            pl.BlockSpec((tile_rows, _LANE), lambda i: (i, 0)),
        ],
        out_specs=pl.BlockSpec((tile_rows, _LANE), lambda i: (i, 0)),
        compiler_params=pltpu.CompilerParams(
            dimension_semantics=("parallel",),
            vmem_limit_bytes=vmem_limit,
        ),
        cost_estimate=pl.CostEstimate(
            flops=8 * n_pad,                 # 4 mul + 4 add per sample
            transcendentals=0,
            bytes_accessed=16 * n_pad + 24,  # read + write f32[N,2] + params
        ),
    )(params, x_rows)

    # Output is already in row-major (N, 2) order; drop the tail pad.
    y = out_rows.reshape(n_pad, 2)[:n]
    return y.astype(orig_dtype)


if __name__ == "__main__":
    key = jax.random.PRNGKey(0)
    kx, kw, kb, kx2 = jax.random.split(key, 4)

    # nn.Linear(2, 2) parameters, torch-style uniform(-1/sqrt(fan_in), +).
    bound = 1.0 / jnp.sqrt(2.0)
    weight = jax.random.uniform(kw, (2, 2), jnp.float32, -bound, bound)
    bias = jax.random.uniform(kb, (2,), jnp.float32, -bound, bound)

    # Small XOR-style batch (N=8): tail pad + single-block path.
    x = jax.random.uniform(kx, (8, 2), jnp.float32, 0.0, 1.0)
    y = linear_classifier_forward(x, weight, bias)
    jax.block_until_ready(y)
    y_ref = x @ weight.T + bias
    assert y.shape == (8, 2)
    assert jnp.allclose(y, y_ref, atol=1e-5, rtol=1e-5)

    # Larger batch: multi-tile grid (parallel axis) with an uneven final block.
    x2 = jax.random.uniform(kx2, (2600, 2), jnp.float32, -1.0, 1.0)
    y2 = linear_classifier_forward(x2, weight, bias)
    jax.block_until_ready(y2)
    y2_ref = x2 @ weight.T + bias
    assert y2.shape == (2600, 2)
    assert jnp.allclose(y2, y2_ref, atol=1e-5, rtol=1e-5)

    print("KERNEL_OK")
</pallas_src>

<mosaic_0001>
module attributes {stable_mosaic.version = 11 : i64} {
  func.func @_linear2x2_kernel(%arg0: i32, %arg1: memref<6xf32, #tpu.memory_space<smem>>, %arg2: memref<1x128xf32, #tpu.memory_space<vmem>>, %arg3: memref<1x128xf32, #tpu.memory_space<vmem>>) attributes {dimension_semantics = [#tpu.dimension_semantics<parallel>], iteration_bounds = array<i64: 1>, scalar_prefetch = 0 : i64, scratch_operands = 0 : i64, tpu.core_type = #tpu.core_type<tc>, window_params = [{transform_indices = @transform_0, window_bounds = array<i64: 6>}, {transform_indices = @transform_1, window_bounds = array<i64: 1, 128>}, {transform_indices = @transform_2, window_bounds = array<i64: 1, 128>}]} {
    %c0 = arith.constant 0 : index
    %c0_0 = arith.constant 0 : index
    %0 = vector.load %arg2[%c0, %c0_0] : memref<1x128xf32, #tpu.memory_space<vmem>>, vector<1x128xf32>
    %1 = tpu.iota {dimensions = array<i32: 1>} : vector<1x128xi32>
    %c2_i32 = arith.constant 2 : i32
    %c0_i32 = arith.constant 0 : i32
    %2 = arith.cmpi eq, %c2_i32, %c0_i32 : i32
    %c1_i32 = arith.constant 1 : i32
    %3 = arith.select %2, %c1_i32, %c2_i32 : i32
    %4 = vector.broadcast %3 : i32 to vector<1x128xi32>
    %5 = arith.remsi %1, %4 : vector<1x128xi32>
    %c0_i32_1 = arith.constant 0 : i32
    %6 = vector.broadcast %c0_i32_1 : i32 to vector<1x128xi32>
    %7 = arith.cmpi ne, %5, %6 : vector<1x128xi32>
    %c0_i32_2 = arith.constant 0 : i32
    %8 = vector.broadcast %c0_i32_2 : i32 to vector<1x128xi32>
    %9 = arith.cmpi slt, %5, %8 : vector<1x128xi32>
    %c0_i32_3 = arith.constant 0 : i32
    %10 = arith.cmpi slt, %3, %c0_i32_3 : i32
    %11 = vector.broadcast %10 : i1 to vector<1x128xi1>
    %12 = vector.broadcast %11 : vector<1x128xi1> to vector<1x128xi1>
    %13 = arith.xori %9, %12 : vector<1x128xi1>
    %14 = arith.andi %13, %7 : vector<1x128xi1>
    %15 = vector.broadcast %3 : i32 to vector<1x128xi32>
    %16 = arith.addi %5, %15 : vector<1x128xi32>
    %17 = arith.select %14, %16, %5 : vector<1x128xi1>, vector<1x128xi32>
    %c0_i32_4 = arith.constant 0 : i32
    %18 = vector.broadcast %c0_i32_4 : i32 to vector<1x128xi32>
    %19 = arith.cmpi eq, %17, %18 : vector<1x128xi32>
    %c127_i32 = arith.constant 127 : i32
    %20 = tpu.dynamic_rotate %0 by %c127_i32 dim 1 : vector<1x128xf32>, i32 -> vector<1x128xf32>
    %c1_i32_5 = arith.constant 1 : i32
    %21 = tpu.dynamic_rotate %0 by %c1_i32_5 dim 1 : vector<1x128xf32>, i32 -> vector<1x128xf32>
    %22 = arith.select %19, %20, %21 : vector<1x128xi1>, vector<1x128xf32>
    %c0_6 = arith.constant 0 : index
    %23 = memref.load %arg1[%c0_6] : memref<6xf32, #tpu.memory_space<smem>>
    %c3 = arith.constant 3 : index
    %24 = memref.load %arg1[%c3] : memref<6xf32, #tpu.memory_space<smem>>
    %25 = vector.broadcast %23 : f32 to vector<1x128xf32>
    %26 = vector.broadcast %24 : f32 to vector<1x128xf32>
    %27 = arith.select %19, %25, %26 : vector<1x128xi1>, vector<1x128xf32>
    %c1 = arith.constant 1 : index
    %28 = memref.load %arg1[%c1] : memref<6xf32, #tpu.memory_space<smem>>
    %c2 = arith.constant 2 : index
    %29 = memref.load %arg1[%c2] : memref<6xf32, #tpu.memory_space<smem>>
    %30 = vector.broadcast %28 : f32 to vector<1x128xf32>
    %31 = vector.broadcast %29 : f32 to vector<1x128xf32>
    %32 = arith.select %19, %30, %31 : vector<1x128xi1>, vector<1x128xf32>
    %c4 = arith.constant 4 : index
    %33 = memref.load %arg1[%c4] : memref<6xf32, #tpu.memory_space<smem>>
    %c5 = arith.constant 5 : index
    %34 = memref.load %arg1[%c5] : memref<6xf32, #tpu.memory_space<smem>>
    %35 = vector.broadcast %33 : f32 to vector<1x128xf32>
    %36 = vector.broadcast %34 : f32 to vector<1x128xf32>
    %37 = arith.select %19, %35, %36 : vector<1x128xi1>, vector<1x128xf32>
    %38 = arith.mulf %0, %27 : vector<1x128xf32>
    %39 = arith.mulf %22, %32 : vector<1x128xf32>
    %40 = arith.addf %38, %39 : vector<1x128xf32>
    %41 = arith.addf %40, %37 : vector<1x128xf32>
    %c0_7 = arith.constant 0 : index
    %c0_8 = arith.constant 0 : index
    %42 = vector.load %arg3[%c0_7, %c0_8] : memref<1x128xf32, #tpu.memory_space<vmem>>, vector<1x128xf32>
    tpu.vector_store %arg3[%c0_7, %c0_8], %41 {strides = array<i32>} : memref<1x128xf32, #tpu.memory_space<vmem>>, vector<1x128xf32>,
    return
  }
  func.func @transform_0(%arg0: i32) -> i32 {
    %c0_i32 = arith.constant 0 : i32
    %c0_i32_0 = arith.constant 0 : i32
    return %c0_i32 : i32
  }
  func.func @transform_1(%arg0: i32) -> (i32, i32) {
    %c0_i32 = arith.constant 0 : i32
    %c0_i32_0 = arith.constant 0 : i32
    return %arg0, %c0_i32 : i32, i32
  }
  func.func @transform_2(%arg0: i32) -> (i32, i32) {
    %c0_i32 = arith.constant 0 : i32
    %c0_i32_0 = arith.constant 0 : i32
    return %arg0, %c0_i32 : i32, i32
  }
}

</mosaic_0001>

<bundles_post_ra>
// kernel: tpu_custom_call.1
= control target key start
LH: loop header
LB: loop body
LE: loop exit
PB: predicated region body
PF: predicated region fallthrough
CT: control target
= control target key end

     0   :  { %7 = vsyncpa [#allocation5], 0  ;;  %s203_s0 = inlined_call_operand.hbm [shape: f32[6], index: 0, kind: input, shape index: {}]   ;;  %s204_s1 = inlined_call_operand.hbm [shape: f32[1,128], index: 1, kind: input, shape index: {}]   ;;  %s205_s2 = inlined_call_operand.hbm [shape: f32[1,128], index: 2, kind: output, shape index: {}]  }
   0x1   :  { %8 = vsyncpa [#allocation3], 0 }
   0x2   :  { %9 = vsyncpa [#allocation4], 0  ;;  %s15_s11 = sshll.u32 %s203_s0, 4  ;;  %s24_s14 = sshll.u32 %s204_s1, 4  ;;  %s16_s11 = int_to_ptr.hbm [resolvable:$true] %s15_s11  ;;  %s25_s14 = int_to_ptr.hbm [resolvable:$true] %s24_s14 }
   0x3   :  { %s174_s15 = smov [#allocation2]   ;;  %s175_s16 = smov [#allocation6]  }
   0x4   :  { %18 = dma.hbm_to_smem %s16_s11, 16, %s174_s15, [#allocation5]  }
   0x5   :  { %s26_s17 = sshll.u32 %s175_s16, 4  ;;  %s27_s17 = int_to_ptr.vmem [resolvable:$true] %s26_s17 }
   0x6   :  { %29 = dma.hbm_to_vmem [thread:$0]  %s25_s14, 16, %s27_s17, [#allocation3]  }
   0x7   :  { %168 = dma.done.wait [#allocation5], 16  }
   0x8   :  { %169 = vsyncadd [#allocation5], 4294967280 }
   0x9   :  { %170 = dma.done.wait [#allocation3], 16  }
   0xa   :  { %171 = vsyncadd [#allocation3], 4294967280 }
   0xb   :  { %38 = sfence }
   0xc   :  { %v39_v0 = vld [vmem:[#allocation6] sm:$0x1]  ;;  %s176_s18 = smov 127   ;;  %s177_s0 = smov 1   ;;  %v40_v1 = vlaneseq }
   0xd   :  { %55 = vrot.lane.b32.xlu0 %v39_v0, %s176_s18  ;;  %s60_s19 = sld [smem:[#allocation2]]  ;;  %s178_s24 = smov [#allocation7]  }
   0xe   :  { %v41_v2 = vand.u32 127, %v40_v1  ;;  %s98_s1 = sld [smem:[#allocation2 + $0x3]]  ;;  %s85_s25 = sshll.u32 %s178_s24, 4  ;;  %s86_s25 = int_to_ptr.vmem [resolvable:$true] %s85_s25 }
   0xf   :  { %s99_s20 = sld [smem:[#allocation2 + $0x1]]  ;;  %s87_s28 = sshll.u32 %s205_s2, 4  ;;  %s88_s28 = int_to_ptr.hbm [resolvable:$true] %s87_s28 }
  0x10   :  { %s100_s21 = sld [smem:[#allocation2 + $0x2]]  ;;  %v46_v3 = vand.u32 1, %v41_v2 }
  0x11   :  { %s101_s22 = sld [smem:[#allocation2 + $0x4]] }
  0x12   :  { %s102_s23 = sld [smem:[#allocation2 + $0x5]]  ;;  %vm54_vm0 = vcmp.eq.s32.totalorder %v46_v3, 0 }
  0x13   :  { %v62_v5 = vstv %s60_s19 }
  0x14   :  { %v63_v6 = vstv %s98_s1 }
  0x15   :  { %57 = vrot.lane.b32.xlu0 %v39_v0, %s177_s0  ;;  %v67_v7 = vstv %s99_s20  ;;  %v64_v9 = vsel %vm54_vm0, %v62_v5, %v63_v6 }
  0x16   :  { %v68_v8 = vstv %s100_s21  ;;  %v75_v11 = vmul.f32 %v64_v9, %v39_v0 }
  0x17   :  { %v69_v10 = vsel %vm54_vm0, %v67_v7, %v68_v8  ;;  %v72_v13 = vstv %s101_s22 }
  0x18   :  { %v73_v14 = vstv %s102_s23 }
  0x19   :  { %v74_v17 = vsel %vm54_vm0, %v72_v13, %v73_v14 }
  0x7f   :  { %v56_v4 = vpop.permute.xlu0 %55 }
  0x87   :  { %v58_v12 = vpop.permute.xlu0 %57 }
  0x88   :  { %v59_v15 = vsel %vm54_vm0, %v56_v4, %v58_v12 }
  0x89   :  { %v76_v16 = vmul.f32 %v69_v10, %v59_v15 }
  0x8b   :  { %v77_v18 = vadd.f32 %v76_v16, %v75_v11 }
  0x8d   :  { %v78_v19 = vadd.f32 %v77_v18, %v74_v17 }
  0x8f   :  { %79 = vst [vmem:[#allocation7] sm:$0x1] %v78_v19 }
  0x90   :  { %90 = dma.vmem_to_hbm [thread:$0]  %s86_s25, 16, %s88_s28, [#allocation4]  }
  0x91   :  { %172 = dma.done.wait [#allocation4], 16  }
  0x92   :  { %173 = vsyncadd [#allocation4], 4294967280 }
  0x93   :  { %95 = vsyncpa [#allocation3], 1 }
  0x94   :  { %96 = vsyncpa [#allocation4], 1 }
  0x95   :  { %97 = vsyncpa [#allocation5], 1 }

</bundles_post_ra>
